<compile_context>
chip_gen: v7x
topology: tpu7x:2x2x1
jax: 0.10.0
libtpu: 0.0.40
codegen_flags: <defaults>
</compile_context>

<pallas_src>
import functools

import jax
import jax.numpy as jnp
from jax.experimental import pallas as pl
from jax.experimental.pallas import tpu as pltpu

_FINAL_SLAB_LANES = 128  # lane-dense width for the padded `final` output


def _fusion_kernel(x_ref, w1_ref, b1_ref, w2_ref, b2_ref, wf_ref, bf_ref,
                   final_ref, combined_ref):
    x = x_ref[...].astype(jnp.float32)                       # [B, ia+iv]

    # Fused fc_audio/fc_visual via block-diagonal W1, then ReLU.
    h = jnp.dot(x, w1_ref[...], preferred_element_type=jnp.float32) + b1_ref[...]
    h = jnp.maximum(h, 0.0)                                  # [B, 2H]  == [out_a | out_v]

    # Fused attn_audio/attn_visual logits via block-diagonal W2.
    logits = jnp.dot(h, w2_ref[...], preferred_element_type=jnp.float32) + b2_ref[...]

    # Segmented (per-modality) softmax over the full 2H lanes — no slicing/concat.
    two_h = logits.shape[1]
    H = two_h // 2
    lane = jax.lax.broadcasted_iota(jnp.int32, logits.shape, dimension=1)
    is_audio = lane < H

    neg_inf = jnp.float32(-jnp.inf)
    m_a = jnp.max(jnp.where(is_audio, logits, neg_inf), axis=-1, keepdims=True)
    m_v = jnp.max(jnp.where(is_audio, neg_inf, logits), axis=-1, keepdims=True)
    m = jnp.where(is_audio, m_a, m_v)

    e = jnp.exp(logits - m)
    s_a = jnp.sum(jnp.where(is_audio, e, 0.0), axis=-1, keepdims=True)
    s_v = jnp.sum(jnp.where(is_audio, 0.0, e), axis=-1, keepdims=True)
    s = jnp.where(is_audio, s_a, s_v)

    attn = e * pl.reciprocal(s, approx=True)                 # [B, 2H]

    combined = h * attn                                      # [B, 2H] (already "concatenated")
    combined_ref[...] = combined

    # Final projection [2H -> 1] on VPU + XLU (lane reduce), not the MXU.
    final = jnp.sum(combined * wf_ref[...], axis=-1, keepdims=True) + bf_ref[...]  # [B, 1]
    # Lane-dense store: broadcast into a [B, 128] slab (wrapper slices lane 0).
    final_ref[...] = jnp.broadcast_to(final, final_ref.shape)


@jax.jit
def multimodal_mlp_forward(x_audio, x_visual, packed):
    """Fused forward pass. All operands are single full VMEM blocks (no grid)."""
    x = jnp.concatenate([x_audio, x_visual], axis=1)         # [B, ia+iv]
    B = x.shape[0]
    two_h = packed["w1"].shape[1]

    operands = (x, packed["w1"], packed["b1"], packed["w2"], packed["b2"],
                packed["wf"], packed["bf"])

    out_shapes = (
        jax.ShapeDtypeStruct((B, _FINAL_SLAB_LANES), jnp.float32),  # padded final slab
        jax.ShapeDtypeStruct((B, two_h), jnp.float32),              # combined
    )

    fn = pl.pallas_call(
        _fusion_kernel,
        out_shape=out_shapes,
        in_specs=[pl.BlockSpec(memory_space=pltpu.VMEM) for _ in operands],
        out_specs=(pl.BlockSpec(memory_space=pltpu.VMEM),
                   pl.BlockSpec(memory_space=pltpu.VMEM)),
    )
    final_slab, combined = fn(*operands)
    final = final_slab[:, :1]                                # [B, 1]
    return final, combined


def init_params(key, input_size_audio, input_size_visual, hidden_size):
    """PyTorch-Linear-like uniform init. Weights stored as [in, out]."""
    ks = jax.random.split(key, 10)

    def lin(kw, kb, fan_in, fan_out):
        bound = 1.0 / jnp.sqrt(fan_in)
        w = jax.random.uniform(kw, (fan_in, fan_out), jnp.float32, -bound, bound)
        b = jax.random.uniform(kb, (1, fan_out), jnp.float32, -bound, bound)
        return w, b

    wa, ba = lin(ks[0], ks[1], input_size_audio, hidden_size)
    wv, bv = lin(ks[2], ks[3], input_size_visual, hidden_size)
    waa, baa = lin(ks[4], ks[5], hidden_size, hidden_size)
    wav, bav = lin(ks[6], ks[7], hidden_size, hidden_size)
    wf, bf = lin(ks[8], ks[9], 2 * hidden_size, 1)
    return dict(wa=wa, ba=ba, wv=wv, bv=bv, waa=waa, baa=baa,
                wav=wav, bav=bav, wf=wf, bf=bf)


def pack_params(p):
    """Build block-diagonal fused weights once, outside the kernel."""
    ia, H = p["wa"].shape
    iv = p["wv"].shape[0]

    w1 = jnp.zeros((ia + iv, 2 * H), jnp.float32)
    w1 = w1.at[:ia, :H].set(p["wa"]).at[ia:, H:].set(p["wv"])
    b1 = jnp.concatenate([p["ba"], p["bv"]], axis=1)          # [1, 2H]

    w2 = jnp.zeros((2 * H, 2 * H), jnp.float32)
    w2 = w2.at[:H, :H].set(p["waa"]).at[H:, H:].set(p["wav"])
    b2 = jnp.concatenate([p["baa"], p["bav"]], axis=1)        # [1, 2H]

    wf = p["wf"].T                                            # [1, 2H] row vector
    bf = p["bf"]                                              # [1, 1]
    return dict(w1=w1, b1=b1, w2=w2, b2=b2, wf=wf, bf=bf)


def _reference_forward(x_audio, x_visual, p):
    """Pure-JAX reference of the PyTorch forward, for verification."""
    out_a = jax.nn.relu(x_audio @ p["wa"] + p["ba"])
    out_v = jax.nn.relu(x_visual @ p["wv"] + p["bv"])
    attn_a = jax.nn.softmax(out_a @ p["waa"] + p["baa"], axis=-1)
    attn_v = jax.nn.softmax(out_v @ p["wav"] + p["bav"], axis=-1)
    out_a = out_a * attn_a
    out_v = out_v * attn_v
    combined = jnp.concatenate([out_a, out_v], axis=1)
    final = combined @ p["wf"] + p["bf"]
    return final, combined


if __name__ == "__main__":
    # Shapes implied by the module: 5 audio features, 5 visual features,
    # hidden_size=64 (class default) -> combined width 2H = 128 (lane-dense).
    batch = 8
    input_size_audio = 5
    input_size_visual = 5
    hidden_size = 64

    key = jax.random.PRNGKey(0)
    k_xa, k_xv, k_params = jax.random.split(key, 3)

    x_audio = jax.random.normal(k_xa, (batch, input_size_audio), jnp.float32)
    x_visual = jax.random.normal(k_xv, (batch, input_size_visual), jnp.float32)
    params = init_params(k_params, input_size_audio, input_size_visual, hidden_size)
    packed = pack_params(params)

    final_out, combined = multimodal_mlp_forward(x_audio, x_visual, packed)
    jax.block_until_ready((final_out, combined))

    # Sanity check against pure-JAX reference (tolerance loosened slightly for
    # the approx EUP reciprocal in the softmax).
    ref_final, ref_combined = _reference_forward(x_audio, x_visual, params)
    assert final_out.shape == (batch, 1)
    assert combined.shape == (batch, 2 * hidden_size)
    assert jnp.allclose(final_out, ref_final, atol=2e-3, rtol=2e-3)
    assert jnp.allclose(combined, ref_combined, atol=2e-3, rtol=2e-3)

    print("KERNEL_OK")
</pallas_src>

<mosaic_0001>
module attributes {stable_mosaic.version = 11 : i64} {
  func.func @_fusion_kernel(%arg0: memref<8x10xf32, #tpu.memory_space<vmem>>, %arg1: memref<10x128xf32, #tpu.memory_space<vmem>>, %arg2: memref<1x128xf32, #tpu.memory_space<vmem>>, %arg3: memref<128x128xf32, #tpu.memory_space<vmem>>, %arg4: memref<1x128xf32, #tpu.memory_space<vmem>>, %arg5: memref<1x128xf32, #tpu.memory_space<vmem>>, %arg6: memref<1x1xf32, #tpu.memory_space<vmem>>, %arg7: memref<8x128xf32, #tpu.memory_space<vmem>>, %arg8: memref<8x128xf32, #tpu.memory_space<vmem>>) attributes {dimension_semantics = [], scalar_prefetch = 0 : i64, scratch_operands = 0 : i64, tpu.core_type = #tpu.core_type<tc>} {
    %c0 = arith.constant 0 : index
    %c0_0 = arith.constant 0 : index
    %0 = vector.load %arg0[%c0, %c0_0] : memref<8x10xf32, #tpu.memory_space<vmem>>, vector<8x10xf32>
    %c0_1 = arith.constant 0 : index
    %c0_2 = arith.constant 0 : index
    %1 = vector.load %arg1[%c0_1, %c0_2] : memref<10x128xf32, #tpu.memory_space<vmem>>, vector<10x128xf32>
    %cst = arith.constant dense<0.000000e+00> : vector<8x128xf32>
    %2 = tpu.matmul %0, %1, %cst {dimension_numbers = #tpu.dot_dimension_numbers<[1], [0], [0], [1], [0, 0, 1, 1], [], []>} : vector<8x10xf32>, vector<10x128xf32>, vector<8x128xf32> -> vector<8x128xf32>
    %c0_3 = arith.constant 0 : index
    %c0_4 = arith.constant 0 : index
    %3 = vector.load %arg2[%c0_3, %c0_4] : memref<1x128xf32, #tpu.memory_space<vmem>>, vector<1x128xf32>
    %4 = vector.broadcast %3 : vector<1x128xf32> to vector<8x128xf32>
    %5 = arith.addf %2, %4 : vector<8x128xf32>
    %cst_5 = arith.constant 0.000000e+00 : f32
    %6 = vector.broadcast %cst_5 : f32 to vector<8x128xf32>
    %7 = arith.maximumf %5, %6 : vector<8x128xf32>
    %c0_6 = arith.constant 0 : index
    %c0_7 = arith.constant 0 : index
    %8 = vector.load %arg3[%c0_6, %c0_7] : memref<128x128xf32, #tpu.memory_space<vmem>>, vector<128x128xf32>
    %cst_8 = arith.constant dense<0.000000e+00> : vector<8x128xf32>
    %9 = tpu.matmul %7, %8, %cst_8 {dimension_numbers = #tpu.dot_dimension_numbers<[1], [0], [0], [1], [0, 0, 1, 1], [], []>} : vector<8x128xf32>, vector<128x128xf32>, vector<8x128xf32> -> vector<8x128xf32>
    %c0_9 = arith.constant 0 : index
    %c0_10 = arith.constant 0 : index
    %10 = vector.load %arg4[%c0_9, %c0_10] : memref<1x128xf32, #tpu.memory_space<vmem>>, vector<1x128xf32>
    %11 = vector.broadcast %10 : vector<1x128xf32> to vector<8x128xf32>
    %12 = arith.addf %9, %11 : vector<8x128xf32>
    %13 = tpu.iota {dimensions = array<i32: 1>} : vector<8x128xi32>
    %c64_i32 = arith.constant 64 : i32
    %14 = vector.broadcast %c64_i32 : i32 to vector<8x128xi32>
    %15 = arith.cmpi slt, %13, %14 : vector<8x128xi32>
    %cst_11 = arith.constant 0xFF800000 : f32
    %16 = vector.broadcast %cst_11 : f32 to vector<8x128xf32>
    %17 = arith.select %15, %12, %16 : vector<8x128xi1>, vector<8x128xf32>
    %cst_12 = arith.constant dense<0xFF800000> : vector<8xf32>
    %18 = vector.multi_reduction <maximumf>, %17, %cst_12 [1] : vector<8x128xf32> to vector<8xf32>
    %19 = vector.shape_cast %18 : vector<8xf32> to vector<8x1xf32>
    %cst_13 = arith.constant 0xFF800000 : f32
    %20 = vector.broadcast %cst_13 : f32 to vector<8x128xf32>
    %21 = arith.select %15, %20, %12 : vector<8x128xi1>, vector<8x128xf32>
    %cst_14 = arith.constant dense<0xFF800000> : vector<8xf32>
    %22 = vector.multi_reduction <maximumf>, %21, %cst_14 [1] : vector<8x128xf32> to vector<8xf32>
    %23 = vector.shape_cast %22 : vector<8xf32> to vector<8x1xf32>
    %24 = vector.shape_cast %19 : vector<8x1xf32> to vector<8x1xf32>
    %25 = vector.broadcast %24 : vector<8x1xf32> to vector<8x128xf32>
    %26 = vector.shape_cast %23 : vector<8x1xf32> to vector<8x1xf32>
    %27 = vector.broadcast %26 : vector<8x1xf32> to vector<8x128xf32>
    %28 = arith.select %15, %25, %27 : vector<8x128xi1>, vector<8x128xf32>
    %29 = arith.subf %12, %28 : vector<8x128xf32>
    %30 = math.exp %29 : vector<8x128xf32>
    %cst_15 = arith.constant 0.000000e+00 : f32
    %31 = vector.broadcast %cst_15 : f32 to vector<8x128xf32>
    %32 = arith.select %15, %30, %31 : vector<8x128xi1>, vector<8x128xf32>
    %cst_16 = arith.constant dense<0.000000e+00> : vector<8xf32>
    %33 = vector.multi_reduction <add>, %32, %cst_16 [1] : vector<8x128xf32> to vector<8xf32>
    %34 = vector.shape_cast %33 : vector<8xf32> to vector<8x1xf32>
    %cst_17 = arith.constant 0.000000e+00 : f32
    %35 = vector.broadcast %cst_17 : f32 to vector<8x128xf32>
    %36 = arith.select %15, %35, %30 : vector<8x128xi1>, vector<8x128xf32>
    %cst_18 = arith.constant dense<0.000000e+00> : vector<8xf32>
    %37 = vector.multi_reduction <add>, %36, %cst_18 [1] : vector<8x128xf32> to vector<8xf32>
    %38 = vector.shape_cast %37 : vector<8xf32> to vector<8x1xf32>
    %39 = vector.shape_cast %34 : vector<8x1xf32> to vector<8x1xf32>
    %40 = vector.broadcast %39 : vector<8x1xf32> to vector<8x128xf32>
    %41 = vector.shape_cast %38 : vector<8x1xf32> to vector<8x1xf32>
    %42 = vector.broadcast %41 : vector<8x1xf32> to vector<8x128xf32>
    %43 = arith.select %15, %40, %42 : vector<8x128xi1>, vector<8x128xf32>
    %44 = tpu.reciprocal %43 {approx = true} : vector<8x128xf32> -> vector<8x128xf32>
    %45 = arith.mulf %30, %44 : vector<8x128xf32>
    %46 = arith.mulf %7, %45 : vector<8x128xf32>
    %c0_19 = arith.constant 0 : index
    %c0_20 = arith.constant 0 : index
    %47 = vector.load %arg8[%c0_19, %c0_20] : memref<8x128xf32, #tpu.memory_space<vmem>>, vector<8x128xf32>
    tpu.vector_store %arg8[%c0_19, %c0_20], %46 {strides = array<i32>} : memref<8x128xf32, #tpu.memory_space<vmem>>, vector<8x128xf32>,
    %c0_21 = arith.constant 0 : index
    %c0_22 = arith.constant 0 : index
    %48 = vector.load %arg5[%c0_21, %c0_22] : memref<1x128xf32, #tpu.memory_space<vmem>>, vector<1x128xf32>
    %49 = vector.broadcast %48 : vector<1x128xf32> to vector<8x128xf32>
    %50 = arith.mulf %46, %49 : vector<8x128xf32>
    %cst_23 = arith.constant dense<0.000000e+00> : vector<8xf32>
    %51 = vector.multi_reduction <add>, %50, %cst_23 [1] : vector<8x128xf32> to vector<8xf32>
    %52 = vector.shape_cast %51 : vector<8xf32> to vector<8x1xf32>
    %c0_24 = arith.constant 0 : index
    %c0_25 = arith.constant 0 : index
    %53 = vector.load %arg6[%c0_24, %c0_25] : memref<1x1xf32, #tpu.memory_space<vmem>>, vector<1x1xf32>
    %54 = vector.broadcast %53 : vector<1x1xf32> to vector<8x1xf32>
    %55 = arith.addf %52, %54 : vector<8x1xf32>
    %56 = vector.shape_cast %55 : vector<8x1xf32> to vector<8x1xf32>
    %57 = vector.broadcast %56 : vector<8x1xf32> to vector<8x128xf32>
    %c0_26 = arith.constant 0 : index
    %c0_27 = arith.constant 0 : index
    %58 = vector.load %arg7[%c0_26, %c0_27] : memref<8x128xf32, #tpu.memory_space<vmem>>, vector<8x128xf32>
    tpu.vector_store %arg7[%c0_26, %c0_27], %57 {strides = array<i32>} : memref<8x128xf32, #tpu.memory_space<vmem>>, vector<8x128xf32>,
    return
  }
}

</mosaic_0001>

<bundles_post_ra>
// kernel: multimodal_mlp_forward.1
= control target key start
LH: loop header
LB: loop body
LE: loop exit
PB: predicated region body
PF: predicated region fallthrough
CT: control target
= control target key end

     0   :  { %s561_s0 = inlined_call_operand.vmem [shape: f32[8,10], index: 0, kind: input, shape index: {}]   ;;  %s562_s1 = inlined_call_operand.vmem [shape: f32[10,128], index: 1, kind: input, shape index: {}]   ;;  %s563_s2 = inlined_call_operand.vmem [shape: f32[1,128], index: 2, kind: input, shape index: {}]   ;;  %s564_s3 = inlined_call_operand.hbm [shape: f32[128,128], index: 3, kind: input, shape index: {}]   ;;  %s565_s4 = inlined_call_operand.vmem [shape: f32[1,128], index: 4, kind: input, shape index: {}]   ;;  %s566_s5 = inlined_call_operand.vmem [shape: f32[1,128], index: 5, kind: input, shape index: {}]   ;;  %s567_s6 = inlined_call_operand.<no memory space> [shape: f32[1,1], index: 6, kind: input, shape index: {}]   ;;  %s568_s7 = inlined_call_operand.vmem [shape: f32[8,128], index: 7, kind: output, shape index: {0}]   ;;  %s569_s8 = inlined_call_operand.hbm [shape: f32[8,128], index: 8, kind: output, shape index: {1}]  }
   0x1   :  { %v14_v0 = vstv %s567_s6 }
   0x2   :  { %15 = vst [vmem:[#allocation2] sm:$0x1] %v14_v0 }
   0x3   :  { %16 = vsyncpa [#allocation4], 0 }
   0x4   :  { %17 = vsyncpa [#allocation5], 0  ;;  %s453_s29 = smov [#allocation3]   ;;  %s405_s11 = scalar_lea.hbm %s564_s3, 2048 }
   0x5   :  { %s29_s30 = sshll.u32 %s453_s29, 4  ;;  %p406_p0 = scmp.ne.s32.totalorder %s564_s3, %s405_s11  ;;  %s30_s30 = int_to_ptr.vmem [resolvable:$true] %s29_s30 }
   0x6   :  { %p409_p1 = scmp.lt.u32.totalorder %s405_s11, %s564_s3 }
   0x8   :  { %p411_p2 = pnand %p409_p1, %p406_p0 }
   0xa   :  { %414 = shalt.err (!%p411_p2)
}
   0xb   :  { %s415_s6 = scalar_lea.vmem %s30_s30, 2048  ;;  %p420_p4 = scmp.lt.s32.totalorder %s30_s30, %s30_s30 }
   0xc   :  { %p416_p3 = scmp.ne.s32.totalorder %s30_s30, %s415_s6  ;;  %p421_p5 = scmp.lt.s32.totalorder %s415_s6, %s415_s6 }
   0xe   :  { %p422_p6 = por %p421_p5, %p420_p4 }
  0x10   :  { %p423_p7 = pnand %p422_p6, %p416_p3 }
  0x12   :  { %426 = shalt.err (!%p423_p7)
}
  0x13   :  { %s454_s16 = smov 128   ;;  %s455_s17 = smov 8  }
  0x14   :  { %35 = dma.hbm_to_vmem [thread:$0]  %s564_s3, 2048, %s30_s30, [#allocation4], %s454_s16, %s454_s16, %s455_s17  }
  0x15   :  { %449 = dma.done.wait [#allocation4], 2048  }
  0x16   :  { %450 = vsyncadd [#allocation4], 4294965248  ;;  %v456_v1 = vmov 0.0|0.0   ;;  %vm457_vm0 = vmmov 0   ;;  %v458_v2 = vmov 0.0   ;;  %vm59_vm1 = vcmask 1041408  }
  0x17   :  { %362 = vmatprep.subr.bf16.mxu0 %v456_v1  ;;  %366 = vmatprep.subr.bf16.mxu1 %v456_v1  ;;  %v46_v3 = vld [vmem:[%s562_s1] sm:$0xff]  ;;  %v47_v4 = vld [vmem:[%s562_s1 + $0x8] sm:$0x3]  ;;  %vm459_vm2 = vmmov 1   ;;  %v136_v8 = vld [vmem:[#allocation3 + $0x10] sm:$0xff]  ;;  %vm55_vm4 = vcmask 80896   ;;  %v227_v36 = vlaneseq }
  0x18   :  { %324 = vmatprep.mubr.msk.f32.mxu0 %vm457_vm0, %v458_v2  ;;  %359 = vmatprep.mubr.msk.f32.mxu1 %vm457_vm0, %v458_v2  ;;  %vm364_vm3 = vmpackc.low %vm59_vm1, %vm459_vm2  ;;  %v363_v5 = vpack.c.bf16 %v47_v4, %v46_v3  ;;  %v134_v6 = vld [vmem:[#allocation3] sm:$0xff]  ;;  %v135_v7 = vld [vmem:[#allocation3 + $0x8] sm:$0xff]  ;;  %v460_v60 = vmov 0   ;;  %s461_s27 = smov [#allocation6]  }
  0x19   :  { %v367_v9 = vpack.c.bf16 %v135_v7, %v134_v6  ;;  %v137_v10 = vld [vmem:[#allocation3 + $0x18] sm:$0xff]  ;;  %v138_v13 = vld [vmem:[#allocation3 + $0x20] sm:$0xff]  ;;  %v139_v14 = vld [vmem:[#allocation3 + $0x28] sm:$0xff]  ;;  %v228_v37 = vand.u32 127, %v227_v36  ;;  %399 = vset.pattern.permute.xlu1 %v460_v60  ;;  %400 = vset.pattern.permute.xlu0 %v460_v60  ;;  %s283_s28 = sshll.u32 %s461_s27, 4  ;;  %s284_s28 = int_to_ptr.vmem [resolvable:$true] %s283_s28 }
  0x1a   :  { %365 = vmatpush3.bf16.msk.msra.mxu0 %vm364_vm3, %v363_v5  ;;  %v45_v11 = vld [vmem:[%s561_s0] sm:$0xff]  ;;  %v370_v12 = vpack.c.bf16 %v137_v10, %v136_v8  ;;  %v373_v15 = vpack.c.bf16 %v139_v14, %v138_v13  ;;  %v140_v16 = vld [vmem:[#allocation3 + $0x30] sm:$0xff]  ;;  %v143_v20 = vld [vmem:[#allocation3 + $0x48] sm:$0xff]  ;;  %s427_s29 = scalar_lea.vmem %s284_s28, 128  ;;  %p432_p9 = scmp.lt.s32.totalorder %s284_s28, %s284_s28 }
  0x1b   :  { %368 = vmatpush3.bf16.msra.mxu1 %v367_v9  ;;  %v141_v17 = vld [vmem:[#allocation3 + $0x38] sm:$0xff]  ;;  %v142_v19 = vld [vmem:[#allocation3 + $0x40] sm:$0xff]  ;;  %v144_v22 = vld [vmem:[#allocation3 + $0x50] sm:$0xff]  ;;  %vm229_vm5 = vcmp.lt.s32.totalorder %v228_v37, 64  ;;  %p428_p8 = scmp.ne.s32.totalorder %s284_s28, %s427_s29  ;;  %p433_p10 = scmp.lt.s32.totalorder %s427_s29, %s427_s29 }
  0x1c   :  { %369 = vmatprep.subr.bf16.mxu1 %v456_v1  ;;  %v376_v18 = vpack.c.bf16 %v141_v17, %v140_v16  ;;  %v379_v21 = vpack.c.bf16 %v143_v20, %v142_v19  ;;  %v145_v23 = vld [vmem:[#allocation3 + $0x58] sm:$0xff]  ;;  %v146_v25 = vld [vmem:[#allocation3 + $0x60] sm:$0xff]  ;;  %v147_v26 = vld [vmem:[#allocation3 + $0x68] sm:$0xff] }
  0x1d   :  { %325 = vmatmul.mubr.msk.f32.vlgmr.msra.gmra.mrb[0].mxu0 %vm55_vm4, %v45_v11  ;;  %v382_v24 = vpack.c.bf16 %v145_v23, %v144_v22  ;;  %v385_v27 = vpack.c.bf16 %v147_v26, %v146_v25  ;;  %v148_v28 = vld [vmem:[#allocation3 + $0x70] sm:$0xff]  ;;  %v149_v29 = vld [vmem:[#allocation3 + $0x78] sm:$0xff]  ;;  %p434_p11 = por %p433_p10, %p432_p9 }
  0x1e   :  { %v388_v30 = vpack.c.bf16 %v149_v29, %v148_v28  ;;  %v294_v31 = vld [vmem:[%s563_s2] ss:$0 sm:$0xff] }
  0x1f   :  { %371 = vmatpush3.bf16.msra.mxu1 %v370_v12  ;;  %v297_v38 = vld [vmem:[%s565_s4] ss:$0 sm:$0xff]  ;;  %p435_p12 = pnand %p434_p11, %p428_p8 }
  0x20   :  { %372 = vmatprep.subr.bf16.mxu1 %v456_v1  ;;  %v298_v57 = vld [vmem:[%s566_s5] ss:$0 sm:$0xff] }
  0x21   :  { %v299_v61 = vld [vmem:[#allocation2] ss:$0 sm:$0xff] }
  0x23   :  { %374 = vmatpush3.bf16.msra.mxu1 %v373_v15 }
  0x24   :  { %375 = vmatprep.subr.bf16.mxu1 %v456_v1 }
  0x27   :  { %377 = vmatpush3.bf16.msra.mxu1 %v376_v18 }
  0x28   :  { %378 = vmatprep.subr.bf16.mxu1 %v456_v1 }
  0x2b   :  { %380 = vmatpush3.bf16.msra.mxu1 %v379_v21 }
  0x2c   :  { %381 = vmatprep.subr.bf16.mxu1 %v456_v1 }
  0x2f   :  { %383 = vmatpush3.bf16.msra.mxu1 %v382_v24 }
  0x30   :  { %384 = vmatprep.subr.bf16.mxu1 %v456_v1 }
  0x33   :  { %386 = vmatpush3.bf16.msra.mxu1 %v385_v27 }
  0x34   :  { %387 = vmatprep.subr.bf16.mxu1 %v456_v1 }
  0x37   :  { %389 = vmatpush3.bf16.msra.mxu1 %v388_v30 }
  0xf0   :  { %v129_v32 = vpop.f32.mrb[0].mxu0 }
  0xf1   :  { %v130_v33 = vadd.f32 %v294_v31, %v129_v32  ;;  %v326_v34 = vpop.f32.mrb[1].mxu0 }
  0xf3   :  { %v133_v35 = vmax.f32 %v130_v33, 0.0 }
  0xf5   :  { %360 = vmatmul.mubr.f32.vlgmr.msra.gmra.mrb[0].mxu1 %v133_v35 }
 0x1c8   :  { %v223_v39 = vpop.f32.mrb[0].mxu1 }
 0x1c9   :  { %v224_v40 = vadd.f32 %v297_v38, %v223_v39  ;;  %v361_v41 = vpop.f32.mrb[1].mxu1 }
 0x1cb   :  { %v230_v42 = vsel %vm229_vm5, %v224_v40, -inf  ;;  %v233_v43 = vsel %vm229_vm5, -inf, %v224_v40 }
 0x1cc   :  { %231 = vmax.xlane.f32.xlu0 %v230_v42 }
 0x1d0   :  { %234 = vmax.xlane.f32.xlu0 %v233_v43 }
 0x259   :  { %v232_v44 = vpop.xlane.xlu0 %231 }
 0x25d   :  { %v235_v45 = vpop.xlane.xlu0 %234 }
 0x25e   :  { %v236_v46 = vsel %vm229_vm5, %v232_v44, %v235_v45 }
 0x25f   :  { %v237_v47 = vsub.f32 %v224_v40, %v236_v46 }
 0x261   :  { %v238_v48 = vmul.f32 1.442695, %v237_v47 }
 0x263   :  { %401 = vpow2.f32 %v238_v48 }
 0x26d   :  { %v402_v49 = vpop.eup %401 }
 0x26e   :  { %v240_v50 = vsel %vm229_vm5, %v402_v49, 0.0  ;;  %v243_v51 = vsel %vm229_vm5, 0.0, %v402_v49 }
 0x26f   :  { %241 = vadd.xlane.f32.xlu1 %v240_v50 }
 0x273   :  { %244 = vadd.xlane.f32.xlu1 %v243_v51 }
 0x2fc   :  { %v242_v52 = vpop.xlane.xlu1 %241 }
 0x300   :  { %v245_v53 = vpop.xlane.xlu1 %244 }
 0x301   :  { %v246_v54 = vsel %vm229_vm5, %v242_v52, %v245_v53 }
 0x302   :  { %403 = vrcp.f32 %v246_v54 }
 0x30c   :  { %v404_v55 = vpop.eup %403 }
 0x30d   :  { %v248_v56 = vmul.f32 %v404_v55, %v402_v49 }
 0x30f   :  { %v249_v58 = vmul.f32 %v248_v56, %v133_v35 }
 0x311   :  { %v258_v59 = vmul.f32 %v298_v57, %v249_v58  ;;  %250 = vst [vmem:[#allocation6] sm:$0xff] %v249_v58 }
 0x313   :  { %259 = vadd.xlane.f32.xlu0 %v258_v59 }
 0x3a0   :  { %v260_v62 = vpop.xlane.xlu0 %259 }
 0x3a1   :  { %v268_v63 = vadd.f32 %v299_v61, %v260_v62 }
 0x3a3   :  { %271 = vperm.xlu1 %399, %v268_v63  }
 0x3a4   :  { %438 = shalt.err (!%p435_p12)
}
 0x3a5   :  { %s439_s9 = scalar_lea.hbm %s569_s8, 128 }
 0x3a6   :  { %p440_p13 = scmp.ne.s32.totalorder %s569_s8, %s439_s9  ;;  %p443_p0 = scmp.lt.u32.totalorder %s439_s9, %s569_s8 }
 0x3a8   :  { %p445_p1 = pnand %p443_p0, %p440_p13 }
 0x3aa   :  { %448 = shalt.err (!%p445_p1)
}
 0x3ab   :  { %286 = dma.vmem_to_hbm [thread:$0]  %s284_s28, 128, %s569_s8, [#allocation5]  }
 0x422   :  { %v272_v0 = vpop.permute.xlu1 %271 }
 0x423   :  { %274 = vst [vmem:[%s568_s7] sm:$0xff] %v272_v0 }
 0x424   :  { %451 = dma.done.wait [#allocation5], 128  }
 0x425   :  { %452 = vsyncadd [#allocation5], 4294967168 }
 0x426   :  { %292 = vsyncpa [#allocation4], 1 }
 0x427   :  { %293 = vsyncpa [#allocation5], 1 }

</bundles_post_ra>
